<compile_context>
chip_gen: v7x
topology: tpu7x:2x2x1
jax: 0.10.0
libtpu: 0.0.40
codegen_flags: <defaults>
</compile_context>

<pallas_src>
import functools
import math

import jax
import jax.numpy as jnp
from jax.experimental import pallas as pl
from jax.experimental.pallas import tpu as pltpu

# --- config (small, consistent with a BERT-style config) ---
BATCH = 2
SEQ = 8
HIDDEN = 32
NUM_HEADS = 4
HEAD_DIM = HIDDEN // NUM_HEADS
LN_EPS = 1e-12

# dot_general dimension numbers implementing y = x @ W.T (contract dim 1 of both):
# lets the MXU consume the PyTorch (out_features, in_features) weight layout
# without materializing an XLU transpose inside the kernel.
_TRANS_B = (((1,), (1,)), ((), ()))


def bert_attention_kernel(x_ref, bias_ref, wq_ref, bq_ref, wk_ref, bk_ref,
                          wv_ref, bv_ref, wo_ref, bo_ref, gamma_ref, beta_ref,
                          out_ref, ctx_ref, *, matmul_dtype):
    f32 = jnp.float32
    x = x_ref[...].astype(f32)                      # (T, H): all tokens of all batches
    x_mm = x.astype(matmul_dtype)

    def linear(w_ref, b_ref):
        w = w_ref[...].astype(matmul_dtype)
        acc = jax.lax.dot_general(x_mm, w, _TRANS_B, preferred_element_type=f32)
        return acc + b_ref[...].astype(f32)         # (1, H) broadcast, single grid step

    q = linear(wq_ref, bq_ref)                      # (T, H) f32
    k = linear(wk_ref, bk_ref)
    v = linear(wv_ref, bv_ref)

    scale = 1.0 / math.sqrt(HEAD_DIM)
    bias = bias_ref[...]                            # (T, T) additive mask (0 / -1e9)
    approx = jnp.dtype(matmul_dtype) != jnp.dtype(jnp.float32)

    # Heads processed with all B*S tokens fused in the row dimension; the additive
    # bias keeps attention block-diagonal over batch elements.  Each head's context
    # is written into the VMEM scratch slab via static lane slices (no concat).
    for h in range(NUM_HEADS):
        lo = h * HEAD_DIM
        qh = q[:, lo:lo + HEAD_DIM].astype(matmul_dtype)        # (T, d)
        kh = k[:, lo:lo + HEAD_DIM].astype(matmul_dtype)
        vh = v[:, lo:lo + HEAD_DIM].astype(matmul_dtype)
        # q @ k.T without a transpose (contract dim 1 of both operands).
        s = jax.lax.dot_general(qh, kh, _TRANS_B, preferred_element_type=f32)
        s = s * scale + bias                                    # (T, T)
        s = s - jnp.max(s, axis=-1, keepdims=True)
        p = jnp.exp(s)
        denom = jnp.sum(p, axis=-1, keepdims=True)
        p = p * pl.reciprocal(denom, approx=approx)             # EUP reciprocal
        # TODO(synk): attention_probs dropout omitted (identity in eval mode).
        ctx_h = jnp.dot(p.astype(matmul_dtype), vh, preferred_element_type=f32)
        ctx_ref[:, lo:lo + HEAD_DIM] = ctx_h

    # BertSelfOutput: dense -> (dropout=identity) -> residual -> LayerNorm (f32)
    ctx = ctx_ref[...].astype(matmul_dtype)                     # (T, H)
    wo = wo_ref[...].astype(matmul_dtype)
    o = jax.lax.dot_general(ctx, wo, _TRANS_B, preferred_element_type=f32)
    o = o + bo_ref[...].astype(f32)

    y = o + x
    mu = jnp.mean(y, axis=-1, keepdims=True)
    var = jnp.mean((y - mu) ** 2, axis=-1, keepdims=True)
    y = (y - mu) * jax.lax.rsqrt(var + LN_EPS)
    y = y * gamma_ref[...].astype(f32) + beta_ref[...].astype(f32)
    out_ref[...] = y.astype(out_ref.dtype)


def bert_attention(x, wq, bq, wk, bk, wv, bv, wo, bo, gamma, beta,
                   *, matmul_dtype=jnp.float32):
    B, S, H = x.shape
    T = B * S
    x2d = x.reshape(T, H)                           # fold batch into the row dim

    # Additive bias that keeps attention block-diagonal over batch elements when
    # all tokens share one row dimension (same mechanism as BERT's additive mask).
    tok_batch = jnp.arange(T, dtype=jnp.int32) // S
    bias = jnp.where(tok_batch[:, None] == tok_batch[None, :],
                     0.0, -1e9).astype(jnp.float32)

    def full(shape):
        return pl.BlockSpec(shape, lambda i, _s=shape: (0,) * len(_s))

    kernel = functools.partial(bert_attention_kernel, matmul_dtype=matmul_dtype)
    out2d = pl.pallas_call(
        kernel,
        out_shape=jax.ShapeDtypeStruct((T, H), x.dtype),
        grid=(1,),  # whole problem in one step: per-step overhead > compute here.
        in_specs=[
            full((T, H)),                     # hidden_states (tokens folded)
            full((T, T)),                     # additive attention bias
            full((H, H)), full((1, H)),       # query W, b
            full((H, H)), full((1, H)),       # key W, b
            full((H, H)), full((1, H)),       # value W, b
            full((H, H)), full((1, H)),       # output dense W, b
            full((1, H)), full((1, H)),       # LayerNorm gamma, beta
        ],
        out_specs=full((T, H)),
        scratch_shapes=[pltpu.VMEM((T, H), jnp.float32)],   # fused context slab
        compiler_params=pltpu.CompilerParams(dimension_semantics=("arbitrary",)),
    )(x2d, bias, wq, bq, wk, bk, wv, bv, wo, bo, gamma, beta)
    return out2d.reshape(B, S, H)


def _jax_reference(x, wq, bq, wk, bk, wv, bv, wo, bo, gamma, beta):
    x32 = x.astype(jnp.float32)
    q = x32 @ wq.T + bq
    k = x32 @ wk.T + bk
    v = x32 @ wv.T + bv
    B, S, H = x.shape

    def split(t):  # (B, S, H) -> (B, heads, S, d)
        return t.reshape(B, S, NUM_HEADS, HEAD_DIM).transpose(0, 2, 1, 3)

    qh, kh, vh = split(q), split(k), split(v)
    scores = jnp.einsum("bhqd,bhkd->bhqk", qh, kh) / math.sqrt(HEAD_DIM)
    probs = jax.nn.softmax(scores, axis=-1)
    ctx = jnp.einsum("bhqk,bhkd->bhqd", probs, vh)
    ctx = ctx.transpose(0, 2, 1, 3).reshape(B, S, H)
    o = ctx @ wo.T + bo
    y = o + x32
    mu = jnp.mean(y, axis=-1, keepdims=True)
    var = jnp.mean((y - mu) ** 2, axis=-1, keepdims=True)
    return (y - mu) * jax.lax.rsqrt(var + LN_EPS) * gamma + beta


if __name__ == "__main__":
    key = jax.random.PRNGKey(0)
    ks = jax.random.split(key, 10)

    # deterministic synthetic parameters (PyTorch Linear layout: (out, in))
    sw = 0.05
    x = jax.random.normal(ks[0], (BATCH, SEQ, HIDDEN), dtype=jnp.float32)
    wq = jax.random.normal(ks[1], (HIDDEN, HIDDEN), dtype=jnp.float32) * sw
    bq = jax.random.normal(ks[2], (1, HIDDEN), dtype=jnp.float32) * sw
    wk = jax.random.normal(ks[3], (HIDDEN, HIDDEN), dtype=jnp.float32) * sw
    bk = jax.random.normal(ks[4], (1, HIDDEN), dtype=jnp.float32) * sw
    wv = jax.random.normal(ks[5], (HIDDEN, HIDDEN), dtype=jnp.float32) * sw
    bv = jax.random.normal(ks[6], (1, HIDDEN), dtype=jnp.float32) * sw
    wo = jax.random.normal(ks[7], (HIDDEN, HIDDEN), dtype=jnp.float32) * sw
    bo = jax.random.normal(ks[8], (1, HIDDEN), dtype=jnp.float32) * sw
    gamma = jnp.ones((1, HIDDEN), dtype=jnp.float32)
    beta = jnp.zeros((1, HIDDEN), dtype=jnp.float32)

    ref = _jax_reference(x, wq, bq, wk, bk, wv, bv, wo, bo, gamma, beta)

    # f32 MXU operands: strict check against the pure-JAX f32 reference.
    out = bert_attention(x, wq, bq, wk, bk, wv, bv, wo, bo, gamma, beta,
                         matmul_dtype=jnp.float32)
    out = jax.block_until_ready(out)
    assert out.shape == (BATCH, SEQ, HIDDEN)
    assert jnp.allclose(out, ref, atol=1e-4, rtol=1e-4), "f32 mismatch vs reference"

    # bf16 MXU operands (recommended on v6e/v7x), f32 accumulation + f32 softmax/LN.
    out_bf16 = bert_attention(x, wq, bq, wk, bk, wv, bv, wo, bo, gamma, beta,
                              matmul_dtype=jnp.bfloat16)
    out_bf16 = jax.block_until_ready(out_bf16)
    assert jnp.allclose(out_bf16, ref, atol=3e-2, rtol=3e-2), "bf16 mismatch vs reference"

    print("KERNEL_OK")
</pallas_src>

<mosaic_0001>
module attributes {stable_mosaic.version = 11 : i64} {
  func.func @bert_attention_kernel(%arg0: i32, %arg1: memref<16x32xf32, #tpu.memory_space<vmem>>, %arg2: memref<16x16xf32, #tpu.memory_space<vmem>>, %arg3: memref<32x32xf32, #tpu.memory_space<vmem>>, %arg4: memref<1x32xf32, #tpu.memory_space<vmem>>, %arg5: memref<32x32xf32, #tpu.memory_space<vmem>>, %arg6: memref<1x32xf32, #tpu.memory_space<vmem>>, %arg7: memref<32x32xf32, #tpu.memory_space<vmem>>, %arg8: memref<1x32xf32, #tpu.memory_space<vmem>>, %arg9: memref<32x32xf32, #tpu.memory_space<vmem>>, %arg10: memref<1x32xf32, #tpu.memory_space<vmem>>, %arg11: memref<1x32xf32, #tpu.memory_space<vmem>>, %arg12: memref<1x32xf32, #tpu.memory_space<vmem>>, %arg13: memref<16x32xf32, #tpu.memory_space<vmem>>, %arg14: memref<16x32xf32, #tpu.memory_space<vmem>>) attributes {dimension_semantics = [#tpu.dimension_semantics<arbitrary>], iteration_bounds = array<i64: 1>, scalar_prefetch = 0 : i64, scratch_operands = 1 : i64, tpu.core_type = #tpu.core_type<tc>, window_params = [{pipeline_mode = #tpu.pipeline_mode<synchronous>, transform_indices = @transform_0, window_bounds = array<i64: 16, 32>}, {pipeline_mode = #tpu.pipeline_mode<synchronous>, transform_indices = @transform_1, window_bounds = array<i64: 16, 16>}, {pipeline_mode = #tpu.pipeline_mode<synchronous>, transform_indices = @transform_2, window_bounds = array<i64: 32, 32>}, {pipeline_mode = #tpu.pipeline_mode<synchronous>, transform_indices = @transform_3, window_bounds = array<i64: 1, 32>}, {pipeline_mode = #tpu.pipeline_mode<synchronous>, transform_indices = @transform_4, window_bounds = array<i64: 32, 32>}, {pipeline_mode = #tpu.pipeline_mode<synchronous>, transform_indices = @transform_5, window_bounds = array<i64: 1, 32>}, {pipeline_mode = #tpu.pipeline_mode<synchronous>, transform_indices = @transform_6, window_bounds = array<i64: 32, 32>}, {pipeline_mode = #tpu.pipeline_mode<synchronous>, transform_indices = @transform_7, window_bounds = array<i64: 1, 32>}, {pipeline_mode = #tpu.pipeline_mode<synchronous>, transform_indices = @transform_8, window_bounds = array<i64: 32, 32>}, {pipeline_mode = #tpu.pipeline_mode<synchronous>, transform_indices = @transform_9, window_bounds = array<i64: 1, 32>}, {pipeline_mode = #tpu.pipeline_mode<synchronous>, transform_indices = @transform_10, window_bounds = array<i64: 1, 32>}, {pipeline_mode = #tpu.pipeline_mode<synchronous>, transform_indices = @transform_11, window_bounds = array<i64: 1, 32>}, {pipeline_mode = #tpu.pipeline_mode<synchronous>, transform_indices = @transform_12, window_bounds = array<i64: 16, 32>}]} {
    %c0 = arith.constant 0 : index
    %c0_0 = arith.constant 0 : index
    %0 = vector.load %arg1[%c0, %c0_0] : memref<16x32xf32, #tpu.memory_space<vmem>>, vector<16x32xf32>
    %c0_1 = arith.constant 0 : index
    %c0_2 = arith.constant 0 : index
    %1 = vector.load %arg3[%c0_1, %c0_2] : memref<32x32xf32, #tpu.memory_space<vmem>>, vector<32x32xf32>
    %cst = arith.constant dense<0.000000e+00> : vector<16x32xf32>
    %2 = tpu.matmul %0, %1, %cst {dimension_numbers = #tpu.dot_dimension_numbers<[1], [1], [0], [0], [0, 0, 1, 0], [], []>} : vector<16x32xf32>, vector<32x32xf32>, vector<16x32xf32> -> vector<16x32xf32>
    %c0_3 = arith.constant 0 : index
    %c0_4 = arith.constant 0 : index
    %3 = vector.load %arg4[%c0_3, %c0_4] : memref<1x32xf32, #tpu.memory_space<vmem>>, vector<1x32xf32>
    %4 = vector.broadcast %3 : vector<1x32xf32> to vector<16x32xf32>
    %5 = arith.addf %2, %4 : vector<16x32xf32>
    %c0_5 = arith.constant 0 : index
    %c0_6 = arith.constant 0 : index
    %6 = vector.load %arg5[%c0_5, %c0_6] : memref<32x32xf32, #tpu.memory_space<vmem>>, vector<32x32xf32>
    %cst_7 = arith.constant dense<0.000000e+00> : vector<16x32xf32>
    %7 = tpu.matmul %0, %6, %cst_7 {dimension_numbers = #tpu.dot_dimension_numbers<[1], [1], [0], [0], [0, 0, 1, 0], [], []>} : vector<16x32xf32>, vector<32x32xf32>, vector<16x32xf32> -> vector<16x32xf32>
    %c0_8 = arith.constant 0 : index
    %c0_9 = arith.constant 0 : index
    %8 = vector.load %arg6[%c0_8, %c0_9] : memref<1x32xf32, #tpu.memory_space<vmem>>, vector<1x32xf32>
    %9 = vector.broadcast %8 : vector<1x32xf32> to vector<16x32xf32>
    %10 = arith.addf %7, %9 : vector<16x32xf32>
    %c0_10 = arith.constant 0 : index
    %c0_11 = arith.constant 0 : index
    %11 = vector.load %arg7[%c0_10, %c0_11] : memref<32x32xf32, #tpu.memory_space<vmem>>, vector<32x32xf32>
    %cst_12 = arith.constant dense<0.000000e+00> : vector<16x32xf32>
    %12 = tpu.matmul %0, %11, %cst_12 {dimension_numbers = #tpu.dot_dimension_numbers<[1], [1], [0], [0], [0, 0, 1, 0], [], []>} : vector<16x32xf32>, vector<32x32xf32>, vector<16x32xf32> -> vector<16x32xf32>
    %c0_13 = arith.constant 0 : index
    %c0_14 = arith.constant 0 : index
    %13 = vector.load %arg8[%c0_13, %c0_14] : memref<1x32xf32, #tpu.memory_space<vmem>>, vector<1x32xf32>
    %14 = vector.broadcast %13 : vector<1x32xf32> to vector<16x32xf32>
    %15 = arith.addf %12, %14 : vector<16x32xf32>
    %c0_15 = arith.constant 0 : index
    %c0_16 = arith.constant 0 : index
    %16 = vector.load %arg2[%c0_15, %c0_16] : memref<16x16xf32, #tpu.memory_space<vmem>>, vector<16x16xf32>
    %17 = vector.extract_strided_slice %5 {offsets = [0, 0], sizes = [16, 8], strides = [1, 1]} : vector<16x32xf32> to vector<16x8xf32>
    %18 = vector.extract_strided_slice %10 {offsets = [0, 0], sizes = [16, 8], strides = [1, 1]} : vector<16x32xf32> to vector<16x8xf32>
    %19 = vector.extract_strided_slice %15 {offsets = [0, 0], sizes = [16, 8], strides = [1, 1]} : vector<16x32xf32> to vector<16x8xf32>
    %cst_17 = arith.constant dense<0.000000e+00> : vector<16x16xf32>
    %20 = tpu.matmul %17, %18, %cst_17 {dimension_numbers = #tpu.dot_dimension_numbers<[1], [1], [0], [0], [0, 0, 1, 0], [], []>} : vector<16x8xf32>, vector<16x8xf32>, vector<16x16xf32> -> vector<16x16xf32>
    %cst_18 = arith.constant 0.353553385 : f32
    %21 = vector.broadcast %cst_18 : f32 to vector<16x16xf32>
    %22 = arith.mulf %20, %21 : vector<16x16xf32>
    %23 = arith.addf %22, %16 : vector<16x16xf32>
    %cst_19 = arith.constant dense<0xFF800000> : vector<16xf32>
    %24 = vector.multi_reduction <maximumf>, %23, %cst_19 [1] : vector<16x16xf32> to vector<16xf32>
    %25 = vector.shape_cast %24 : vector<16xf32> to vector<16x1xf32>
    %26 = vector.broadcast %25 : vector<16x1xf32> to vector<16x16xf32>
    %27 = arith.subf %23, %26 : vector<16x16xf32>
    %28 = math.exp %27 : vector<16x16xf32>
    %cst_20 = arith.constant dense<0.000000e+00> : vector<16xf32>
    %29 = vector.multi_reduction <add>, %28, %cst_20 [1] : vector<16x16xf32> to vector<16xf32>
    %30 = vector.shape_cast %29 : vector<16xf32> to vector<16x1xf32>
    %31 = tpu.reciprocal %30 : vector<16x1xf32> -> vector<16x1xf32>
    %32 = vector.broadcast %31 : vector<16x1xf32> to vector<16x16xf32>
    %33 = arith.mulf %28, %32 : vector<16x16xf32>
    %cst_21 = arith.constant dense<0.000000e+00> : vector<16x8xf32>
    %34 = tpu.matmul %33, %19, %cst_21 {dimension_numbers = #tpu.dot_dimension_numbers<[1], [0], [0], [1], [0, 0, 1, 1], [], []>} : vector<16x16xf32>, vector<16x8xf32>, vector<16x8xf32> -> vector<16x8xf32>
    %c0_22 = arith.constant 0 : index
    %c0_23 = arith.constant 0 : index
    %35 = vector.load %arg14[%c0_22, %c0_23] : memref<16x32xf32, #tpu.memory_space<vmem>>, vector<16x8xf32>
    tpu.vector_store %arg14[%c0_22, %c0_23], %34 {strides = array<i32>} : memref<16x32xf32, #tpu.memory_space<vmem>>, vector<16x8xf32>,
    %36 = vector.extract_strided_slice %5 {offsets = [0, 8], sizes = [16, 8], strides = [1, 1]} : vector<16x32xf32> to vector<16x8xf32>
    %37 = vector.extract_strided_slice %10 {offsets = [0, 8], sizes = [16, 8], strides = [1, 1]} : vector<16x32xf32> to vector<16x8xf32>
    %38 = vector.extract_strided_slice %15 {offsets = [0, 8], sizes = [16, 8], strides = [1, 1]} : vector<16x32xf32> to vector<16x8xf32>
    %cst_24 = arith.constant dense<0.000000e+00> : vector<16x16xf32>
    %39 = tpu.matmul %36, %37, %cst_24 {dimension_numbers = #tpu.dot_dimension_numbers<[1], [1], [0], [0], [0, 0, 1, 0], [], []>} : vector<16x8xf32>, vector<16x8xf32>, vector<16x16xf32> -> vector<16x16xf32>
    %cst_25 = arith.constant 0.353553385 : f32
    %40 = vector.broadcast %cst_25 : f32 to vector<16x16xf32>
    %41 = arith.mulf %39, %40 : vector<16x16xf32>
    %42 = arith.addf %41, %16 : vector<16x16xf32>
    %cst_26 = arith.constant dense<0xFF800000> : vector<16xf32>
    %43 = vector.multi_reduction <maximumf>, %42, %cst_26 [1] : vector<16x16xf32> to vector<16xf32>
    %44 = vector.shape_cast %43 : vector<16xf32> to vector<16x1xf32>
    %45 = vector.broadcast %44 : vector<16x1xf32> to vector<16x16xf32>
    %46 = arith.subf %42, %45 : vector<16x16xf32>
    %47 = math.exp %46 : vector<16x16xf32>
    %cst_27 = arith.constant dense<0.000000e+00> : vector<16xf32>
    %48 = vector.multi_reduction <add>, %47, %cst_27 [1] : vector<16x16xf32> to vector<16xf32>
    %49 = vector.shape_cast %48 : vector<16xf32> to vector<16x1xf32>
    %50 = tpu.reciprocal %49 : vector<16x1xf32> -> vector<16x1xf32>
    %51 = vector.broadcast %50 : vector<16x1xf32> to vector<16x16xf32>
    %52 = arith.mulf %47, %51 : vector<16x16xf32>
    %cst_28 = arith.constant dense<0.000000e+00> : vector<16x8xf32>
    %53 = tpu.matmul %52, %38, %cst_28 {dimension_numbers = #tpu.dot_dimension_numbers<[1], [0], [0], [1], [0, 0, 1, 1], [], []>} : vector<16x16xf32>, vector<16x8xf32>, vector<16x8xf32> -> vector<16x8xf32>
    %c0_29 = arith.constant 0 : index
    %c8 = arith.constant 8 : index
    %54 = vector.load %arg14[%c0_29, %c8] : memref<16x32xf32, #tpu.memory_space<vmem>>, vector<16x8xf32>
    tpu.vector_store %arg14[%c0_29, %c8], %53 {strides = array<i32>} : memref<16x32xf32, #tpu.memory_space<vmem>>, vector<16x8xf32>,
    %55 = vector.extract_strided_slice %5 {offsets = [0, 16], sizes = [16, 8], strides = [1, 1]} : vector<16x32xf32> to vector<16x8xf32>
    %56 = vector.extract_strided_slice %10 {offsets = [0, 16], sizes = [16, 8], strides = [1, 1]} : vector<16x32xf32> to vector<16x8xf32>
    %57 = vector.extract_strided_slice %15 {offsets = [0, 16], sizes = [16, 8], strides = [1, 1]} : vector<16x32xf32> to vector<16x8xf32>
    %cst_30 = arith.constant dense<0.000000e+00> : vector<16x16xf32>
    %58 = tpu.matmul %55, %56, %cst_30 {dimension_numbers = #tpu.dot_dimension_numbers<[1], [1], [0], [0], [0, 0, 1, 0], [], []>} : vector<16x8xf32>, vector<16x8xf32>, vector<16x16xf32> -> vector<16x16xf32>
    %cst_31 = arith.constant 0.353553385 : f32
    %59 = vector.broadcast %cst_31 : f32 to vector<16x16xf32>
    %60 = arith.mulf %58, %59 : vector<16x16xf32>
    %61 = arith.addf %60, %16 : vector<16x16xf32>
    %cst_32 = arith.constant dense<0xFF800000> : vector<16xf32>
    %62 = vector.multi_reduction <maximumf>, %61, %cst_32 [1] : vector<16x16xf32> to vector<16xf32>
    %63 = vector.shape_cast %62 : vector<16xf32> to vector<16x1xf32>
    %64 = vector.broadcast %63 : vector<16x1xf32> to vector<16x16xf32>
    %65 = arith.subf %61, %64 : vector<16x16xf32>
    %66 = math.exp %65 : vector<16x16xf32>
    %cst_33 = arith.constant dense<0.000000e+00> : vector<16xf32>
    %67 = vector.multi_reduction <add>, %66, %cst_33 [1] : vector<16x16xf32> to vector<16xf32>
    %68 = vector.shape_cast %67 : vector<16xf32> to vector<16x1xf32>
    %69 = tpu.reciprocal %68 : vector<16x1xf32> -> vector<16x1xf32>
    %70 = vector.broadcast %69 : vector<16x1xf32> to vector<16x16xf32>
    %71 = arith.mulf %66, %70 : vector<16x16xf32>
    %cst_34 = arith.constant dense<0.000000e+00> : vector<16x8xf32>
    %72 = tpu.matmul %71, %57, %cst_34 {dimension_numbers = #tpu.dot_dimension_numbers<[1], [0], [0], [1], [0, 0, 1, 1], [], []>} : vector<16x16xf32>, vector<16x8xf32>, vector<16x8xf32> -> vector<16x8xf32>
    %c0_35 = arith.constant 0 : index
    %c16 = arith.constant 16 : index
    %73 = vector.load %arg14[%c0_35, %c16] : memref<16x32xf32, #tpu.memory_space<vmem>>, vector<16x8xf32>
    tpu.vector_store %arg14[%c0_35, %c16], %72 {strides = array<i32>} : memref<16x32xf32, #tpu.memory_space<vmem>>, vector<16x8xf32>,
    %74 = vector.extract_strided_slice %5 {offsets = [0, 24], sizes = [16, 8], strides = [1, 1]} : vector<16x32xf32> to vector<16x8xf32>
    %75 = vector.extract_strided_slice %10 {offsets = [0, 24], sizes = [16, 8], strides = [1, 1]} : vector<16x32xf32> to vector<16x8xf32>
    %76 = vector.extract_strided_slice %15 {offsets = [0, 24], sizes = [16, 8], strides = [1, 1]} : vector<16x32xf32> to vector<16x8xf32>
    %cst_36 = arith.constant dense<0.000000e+00> : vector<16x16xf32>
    %77 = tpu.matmul %74, %75, %cst_36 {dimension_numbers = #tpu.dot_dimension_numbers<[1], [1], [0], [0], [0, 0, 1, 0], [], []>} : vector<16x8xf32>, vector<16x8xf32>, vector<16x16xf32> -> vector<16x16xf32>
    %cst_37 = arith.constant 0.353553385 : f32
    %78 = vector.broadcast %cst_37 : f32 to vector<16x16xf32>
    %79 = arith.mulf %77, %78 : vector<16x16xf32>
    %80 = arith.addf %79, %16 : vector<16x16xf32>
    %cst_38 = arith.constant dense<0xFF800000> : vector<16xf32>
    %81 = vector.multi_reduction <maximumf>, %80, %cst_38 [1] : vector<16x16xf32> to vector<16xf32>
    %82 = vector.shape_cast %81 : vector<16xf32> to vector<16x1xf32>
    %83 = vector.broadcast %82 : vector<16x1xf32> to vector<16x16xf32>
    %84 = arith.subf %80, %83 : vector<16x16xf32>
    %85 = math.exp %84 : vector<16x16xf32>
    %cst_39 = arith.constant dense<0.000000e+00> : vector<16xf32>
    %86 = vector.multi_reduction <add>, %85, %cst_39 [1] : vector<16x16xf32> to vector<16xf32>
    %87 = vector.shape_cast %86 : vector<16xf32> to vector<16x1xf32>
    %88 = tpu.reciprocal %87 : vector<16x1xf32> -> vector<16x1xf32>
    %89 = vector.broadcast %88 : vector<16x1xf32> to vector<16x16xf32>
    %90 = arith.mulf %85, %89 : vector<16x16xf32>
    %cst_40 = arith.constant dense<0.000000e+00> : vector<16x8xf32>
    %91 = tpu.matmul %90, %76, %cst_40 {dimension_numbers = #tpu.dot_dimension_numbers<[1], [0], [0], [1], [0, 0, 1, 1], [], []>} : vector<16x16xf32>, vector<16x8xf32>, vector<16x8xf32> -> vector<16x8xf32>
    %c0_41 = arith.constant 0 : index
    %c24 = arith.constant 24 : index
    %92 = vector.load %arg14[%c0_41, %c24] : memref<16x32xf32, #tpu.memory_space<vmem>>, vector<16x8xf32>
    tpu.vector_store %arg14[%c0_41, %c24], %91 {strides = array<i32>} : memref<16x32xf32, #tpu.memory_space<vmem>>, vector<16x8xf32>,
    %c0_42 = arith.constant 0 : index
    %c0_43 = arith.constant 0 : index
    %93 = vector.load %arg14[%c0_42, %c0_43] : memref<16x32xf32, #tpu.memory_space<vmem>>, vector<16x32xf32>
    %c0_44 = arith.constant 0 : index
    %c0_45 = arith.constant 0 : index
    %94 = vector.load %arg9[%c0_44, %c0_45] : memref<32x32xf32, #tpu.memory_space<vmem>>, vector<32x32xf32>
    %cst_46 = arith.constant dense<0.000000e+00> : vector<16x32xf32>
    %95 = tpu.matmul %93, %94, %cst_46 {dimension_numbers = #tpu.dot_dimension_numbers<[1], [1], [0], [0], [0, 0, 1, 0], [], []>} : vector<16x32xf32>, vector<32x32xf32>, vector<16x32xf32> -> vector<16x32xf32>
    %c0_47 = arith.constant 0 : index
    %c0_48 = arith.constant 0 : index
    %96 = vector.load %arg10[%c0_47, %c0_48] : memref<1x32xf32, #tpu.memory_space<vmem>>, vector<1x32xf32>
    %97 = vector.broadcast %96 : vector<1x32xf32> to vector<16x32xf32>
    %98 = arith.addf %95, %97 : vector<16x32xf32>
    %99 = arith.addf %98, %0 : vector<16x32xf32>
    %cst_49 = arith.constant dense<0.000000e+00> : vector<16xf32>
    %100 = vector.multi_reduction <add>, %99, %cst_49 [1] : vector<16x32xf32> to vector<16xf32>
    %101 = vector.shape_cast %100 : vector<16xf32> to vector<16x1xf32>
    %cst_50 = arith.constant 3.200000e+01 : f32
    %102 = vector.broadcast %cst_50 : f32 to vector<16x1xf32>
    %103 = arith.divf %101, %102 : vector<16x1xf32>
    %104 = vector.broadcast %103 : vector<16x1xf32> to vector<16x32xf32>
    %105 = arith.subf %99, %104 : vector<16x32xf32>
    %106 = arith.mulf %105, %105 : vector<16x32xf32>
    %cst_51 = arith.constant dense<0.000000e+00> : vector<16xf32>
    %107 = vector.multi_reduction <add>, %106, %cst_51 [1] : vector<16x32xf32> to vector<16xf32>
    %108 = vector.shape_cast %107 : vector<16xf32> to vector<16x1xf32>
    %cst_52 = arith.constant 3.200000e+01 : f32
    %109 = vector.broadcast %cst_52 : f32 to vector<16x1xf32>
    %110 = arith.divf %108, %109 : vector<16x1xf32>
    %111 = vector.broadcast %103 : vector<16x1xf32> to vector<16x32xf32>
    %112 = arith.subf %99, %111 : vector<16x32xf32>
    %cst_53 = arith.constant 9.99999996E-13 : f32
    %113 = vector.broadcast %cst_53 : f32 to vector<16x1xf32>
    %114 = arith.addf %110, %113 : vector<16x1xf32>
    %115 = math.rsqrt %114 : vector<16x1xf32>
    %116 = vector.broadcast %115 : vector<16x1xf32> to vector<16x32xf32>
    %117 = arith.mulf %112, %116 : vector<16x32xf32>
    %c0_54 = arith.constant 0 : index
    %c0_55 = arith.constant 0 : index
    %118 = vector.load %arg11[%c0_54, %c0_55] : memref<1x32xf32, #tpu.memory_space<vmem>>, vector<1x32xf32>
    %119 = vector.broadcast %118 : vector<1x32xf32> to vector<16x32xf32>
    %120 = arith.mulf %117, %119 : vector<16x32xf32>
    %c0_56 = arith.constant 0 : index
    %c0_57 = arith.constant 0 : index
    %121 = vector.load %arg12[%c0_56, %c0_57] : memref<1x32xf32, #tpu.memory_space<vmem>>, vector<1x32xf32>
    %122 = vector.broadcast %121 : vector<1x32xf32> to vector<16x32xf32>
    %123 = arith.addf %120, %122 : vector<16x32xf32>
    %c0_58 = arith.constant 0 : index
    %c0_59 = arith.constant 0 : index
    %124 = vector.load %arg13[%c0_58, %c0_59] : memref<16x32xf32, #tpu.memory_space<vmem>>, vector<16x32xf32>
    tpu.vector_store %arg13[%c0_58, %c0_59], %123 {strides = array<i32>} : memref<16x32xf32, #tpu.memory_space<vmem>>, vector<16x32xf32>,
    return
  }
  func.func @transform_0(%arg0: i32) -> (i32, i32) {
    %c0_i32 = arith.constant 0 : i32
    %c0_i32_0 = arith.constant 0 : i32
    %c0_i32_1 = arith.constant 0 : i32
    return %c0_i32, %c0_i32_0 : i32, i32
  }
  func.func @transform_1(%arg0: i32) -> (i32, i32) {
    %c0_i32 = arith.constant 0 : i32
    %c0_i32_0 = arith.constant 0 : i32
    %c0_i32_1 = arith.constant 0 : i32
    return %c0_i32, %c0_i32_0 : i32, i32
  }
  func.func @transform_2(%arg0: i32) -> (i32, i32) {
    %c0_i32 = arith.constant 0 : i32
    %c0_i32_0 = arith.constant 0 : i32
    %c0_i32_1 = arith.constant 0 : i32
    return %c0_i32, %c0_i32_0 : i32, i32
  }
  func.func @transform_3(%arg0: i32) -> (i32, i32) {
    %c0_i32 = arith.constant 0 : i32
    %c0_i32_0 = arith.constant 0 : i32
    %c0_i32_1 = arith.constant 0 : i32
    return %c0_i32, %c0_i32_0 : i32, i32
  }
  func.func @transform_4(%arg0: i32) -> (i32, i32) {
    %c0_i32 = arith.constant 0 : i32
    %c0_i32_0 = arith.constant 0 : i32
    %c0_i32_1 = arith.constant 0 : i32
    return %c0_i32, %c0_i32_0 : i32, i32
  }
  func.func @transform_5(%arg0: i32) -> (i32, i32) {
    %c0_i32 = arith.constant 0 : i32
    %c0_i32_0 = arith.constant 0 : i32
    %c0_i32_1 = arith.constant 0 : i32
    return %c0_i32, %c0_i32_0 : i32, i32
  }
  func.func @transform_6(%arg0: i32) -> (i32, i32) {
    %c0_i32 = arith.constant 0 : i32
    %c0_i32_0 = arith.constant 0 : i32
    %c0_i32_1 = arith.constant 0 : i32
    return %c0_i32, %c0_i32_0 : i32, i32
  }
  func.func @transform_7(%arg0: i32) -> (i32, i32) {
    %c0_i32 = arith.constant 0 : i32
    %c0_i32_0 = arith.constant 0 : i32
    %c0_i32_1 = arith.constant 0 : i32
    return %c0_i32, %c0_i32_0 : i32, i32
  }
  func.func @transform_8(%arg0: i32) -> (i32, i32) {
    %c0_i32 = arith.constant 0 : i32
    %c0_i32_0 = arith.constant 0 : i32
    %c0_i32_1 = arith.constant 0 : i32
    return %c0_i32, %c0_i32_0 : i32, i32
  }
  func.func @transform_9(%arg0: i32) -> (i32, i32) {
    %c0_i32 = arith.constant 0 : i32
    %c0_i32_0 = arith.constant 0 : i32
    %c0_i32_1 = arith.constant 0 : i32
    return %c0_i32, %c0_i32_0 : i32, i32
  }
  func.func @transform_10(%arg0: i32) -> (i32, i32) {
    %c0_i32 = arith.constant 0 : i32
    %c0_i32_0 = arith.constant 0 : i32
    %c0_i32_1 = arith.constant 0 : i32
    return %c0_i32, %c0_i32_0 : i32, i32
  }
  func.func @transform_11(%arg0: i32) -> (i32, i32) {
    %c0_i32 = arith.constant 0 : i32
    %c0_i32_0 = arith.constant 0 : i32
    %c0_i32_1 = arith.constant 0 : i32
    return %c0_i32, %c0_i32_0 : i32, i32
  }
  func.func @transform_12(%arg0: i32) -> (i32, i32) {
    %c0_i32 = arith.constant 0 : i32
    %c0_i32_0 = arith.constant 0 : i32
    %c0_i32_1 = arith.constant 0 : i32
    return %c0_i32, %c0_i32_0 : i32, i32
  }
}

</mosaic_0001>

<bundles_post_ra>
// kernel: tpu_custom_call.1
= control target key start
LH: loop header
LB: loop body
LE: loop exit
PB: predicated region body
PF: predicated region fallthrough
CT: control target
= control target key end

     0   :  { %17 = vsyncpa [#allocation4], 0  ;;  %s2399_s0 = inlined_call_operand.hbm [shape: f32[16,32], index: 0, kind: input, shape index: {}]   ;;  %s2400_s1 = inlined_call_operand.hbm [shape: f32[16,16], index: 1, kind: input, shape index: {}]   ;;  %s2401_s2 = inlined_call_operand.hbm [shape: f32[32,32], index: 2, kind: input, shape index: {}]   ;;  %s2402_s3 = inlined_call_operand.vmem [shape: f32[1,32], index: 3, kind: input, shape index: {}]   ;;  %s2403_s4 = inlined_call_operand.hbm [shape: f32[32,32], index: 4, kind: input, shape index: {}]   ;;  %s2404_s5 = inlined_call_operand.vmem [shape: f32[1,32], index: 5, kind: input, shape index: {}]   ;;  %s2405_s6 = inlined_call_operand.hbm [shape: f32[32,32], index: 6, kind: input, shape index: {}]   ;;  %s2406_s7 = inlined_call_operand.vmem [shape: f32[1,32], index: 7, kind: input, shape index: {}]   ;;  %s2407_s8 = inlined_call_operand.hbm [shape: f32[32,32], index: 8, kind: input, shape index: {}]   ;;  %s2408_s9 = inlined_call_operand.vmem [shape: f32[1,32], index: 9, kind: input, shape index: {}]   ;;  %s2409_s10 = inlined_call_operand.vmem [shape: f32[1,32], index: 10, kind: input, shape index: {}]   ;;  %s2410_s11 = inlined_call_operand.vmem [shape: f32[1,32], index: 11, kind: input, shape index: {}]   ;;  %s2411_s12 = inlined_call_operand.hbm [shape: f32[16,32], index: 12, kind: output, shape index: {}]  }
   0x1   :  { %18 = vsyncpa [#allocation7], 0 }
   0x2   :  { %19 = vsyncpa [#allocation10], 0 }
   0x3   :  { %20 = vsyncpa [#allocation13], 0 }
   0x4   :  { %21 = vsyncpa [#allocation5], 0  ;;  %s1991_s21 = smov [#allocation6]   ;;  %s1992_s23 = smov [#allocation9]  }
   0x5   :  { %s39_s22 = sshll.u32 %s1991_s21, 4  ;;  %s65_s24 = sshll.u32 %s1992_s23, 4  ;;  %s40_s22 = int_to_ptr.vmem [resolvable:$true] %s39_s22  ;;  %s2070_s24 = int_to_ptr.vmem [resolvable:$true] %s65_s24 }
   0x6   :  { %s1827_s27 = scalar_lea.hbm %s2400_s1, 256 }
   0x7   :  { %p1828_p0 = scmp.ne.s32.totalorder %s2400_s1, %s1827_s27  ;;  %p1831_p1 = scmp.lt.u32.totalorder %s1827_s27, %s2400_s1 }
   0x9   :  { %p1833_p2 = pnand %p1831_p1, %p1828_p0 }
   0xb   :  { %1836 = shalt.err (!%p1833_p2)
}
   0xc   :  { %s1837_s14 = scalar_lea.vmem %s40_s22, 256  ;;  %p1842_p4 = scmp.lt.s32.totalorder %s40_s22, %s40_s22 }
   0xd   :  { %p1838_p3 = scmp.ne.s32.totalorder %s40_s22, %s1837_s14  ;;  %p1843_p5 = scmp.lt.s32.totalorder %s1837_s14, %s1837_s14 }
   0xf   :  { %p1844_p6 = por %p1843_p5, %p1842_p4 }
  0x11   :  { %p1845_p7 = pnand %p1844_p6, %p1838_p3 }
  0x13   :  { %1848 = shalt.err (!%p1845_p7)
}
  0x14   :  { %s1993_s15 = smov 128   ;;  %s1994_s16 = smov 8  }
  0x15   :  { %45 = dma.hbm_to_vmem [thread:$0]  %s2400_s1, 256, %s40_s22, [#allocation7], %s1993_s15, %s1993_s15, %s1994_s16  }
  0x16   :  { %s1849_s21 = scalar_lea.hbm %s2403_s4, 512 }
  0x17   :  { %p1850_p8 = scmp.ne.s32.totalorder %s2403_s4, %s1849_s21  ;;  %p1853_p9 = scmp.lt.u32.totalorder %s1849_s21, %s2403_s4 }
  0x19   :  { %p1855_p10 = pnand %p1853_p9, %p1850_p8 }
  0x1b   :  { %1858 = shalt.err (!%p1855_p10)
}
  0x1c   :  { %s1859_s28 = scalar_lea.vmem %s2070_s24, 512  ;;  %p1864_p12 = scmp.lt.s32.totalorder %s2070_s24, %s2070_s24 }
  0x1d   :  { %p1860_p11 = scmp.ne.s32.totalorder %s2070_s24, %s1859_s28  ;;  %p1865_p13 = scmp.lt.s32.totalorder %s1859_s28, %s1859_s28 }
  0x1f   :  { %p1866_p0 = por %p1865_p13, %p1864_p12 }
  0x21   :  { %p1867_p1 = pnand %p1866_p0, %p1860_p11 }
  0x23   :  { %1870 = shalt.err (!%p1867_p1)
}
  0x24   :  { %71 = dma.hbm_to_vmem [thread:$0]  %s2403_s4, 512, %s2070_s24, [#allocation10], %s1993_s15, %s1993_s15, %s1994_s16  }
  0x25   :  { %s1995_s29 = smov [#allocation3]   ;;  %s1996_s13 = smov [#allocation8]  }
  0x26   :  { %s27_s30 = sshll.u32 %s1995_s29, 4  ;;  %s51_s14 = sshll.u32 %s1996_s13, 4  ;;  %s28_s30 = int_to_ptr.vmem [resolvable:$true] %s27_s30  ;;  %s2107_s14 = int_to_ptr.vmem [resolvable:$true] %s51_s14 }
  0x27   :  { %s1871_s19 = scalar_lea.hbm %s2399_s0, 256 }
  0x28   :  { %p1872_p2 = scmp.ne.s32.totalorder %s2399_s0, %s1871_s19  ;;  %p1875_p3 = scmp.lt.u32.totalorder %s1871_s19, %s2399_s0 }
  0x2a   :  { %p1877_p4 = pnand %p1875_p3, %p1872_p2 }
  0x2c   :  { %1880 = shalt.err (!%p1877_p4)
}
  0x2d   :  { %s1881_s4 = scalar_lea.vmem %s28_s30, 256  ;;  %p1886_p6 = scmp.lt.s32.totalorder %s28_s30, %s28_s30 }
  0x2e   :  { %p1882_p5 = scmp.ne.s32.totalorder %s28_s30, %s1881_s4  ;;  %p1887_p7 = scmp.lt.s32.totalorder %s1881_s4, %s1881_s4 }
  0x30   :  { %p1888_p8 = por %p1887_p7, %p1886_p6 }
  0x32   :  { %p1889_p9 = pnand %p1888_p8, %p1882_p5 }
  0x34   :  { %1892 = shalt.err (!%p1889_p9)
}
  0x35   :  { %33 = dma.hbm_to_vmem [thread:$0]  %s2399_s0, 256, %s28_s30, [#allocation4], %s1993_s15, %s1993_s15, %s1994_s16  }
  0x36   :  { %s1893_s1 = scalar_lea.hbm %s2401_s2, 512 }
  0x37   :  { %p1894_p10 = scmp.ne.s32.totalorder %s2401_s2, %s1893_s1  ;;  %p1897_p11 = scmp.lt.u32.totalorder %s1893_s1, %s2401_s2 }
  0x39   :  { %p1899_p12 = pnand %p1897_p11, %p1894_p10 }
  0x3b   :  { %1902 = shalt.err (!%p1899_p12)
}
  0x3c   :  { %s1903_s18 = scalar_lea.vmem %s2107_s14, 512  ;;  %p1908_p0 = scmp.lt.s32.totalorder %s2107_s14, %s2107_s14 }
  0x3d   :  { %p1904_p13 = scmp.ne.s32.totalorder %s2107_s14, %s1903_s18  ;;  %p1909_p1 = scmp.lt.s32.totalorder %s1903_s18, %s1903_s18 }
  0x3f   :  { %p1910_p2 = por %p1909_p1, %p1908_p0 }
  0x41   :  { %p1911_p3 = pnand %p1910_p2, %p1904_p13 }
  0x43   :  { %1914 = shalt.err (!%p1911_p3)
}
  0x44   :  { %57 = dma.hbm_to_vmem [thread:$0]  %s2401_s2, 512, %s2107_s14, [#allocation7], %s1993_s15, %s1993_s15, %s1994_s16  }
  0x45   :  { %s1997_s19 = smov [#allocation11]   ;;  %s1998_s21 = smov [#allocation12]  }
  0x46   :  { %s79_s20 = sshll.u32 %s1997_s19, 4  ;;  %s93_s23 = sshll.u32 %s1998_s21, 4  ;;  %s80_s20 = int_to_ptr.vmem [resolvable:$true] %s79_s20  ;;  %s2144_s23 = int_to_ptr.vmem [resolvable:$true] %s93_s23 }
  0x47   :  { %s1915_s24 = scalar_lea.hbm %s2405_s6, 512 }
  0x48   :  { %p1916_p4 = scmp.ne.s32.totalorder %s2405_s6, %s1915_s24  ;;  %p1919_p5 = scmp.lt.u32.totalorder %s1915_s24, %s2405_s6 }
  0x4a   :  { %p1921_p6 = pnand %p1919_p5, %p1916_p4 }
  0x4c   :  { %1924 = shalt.err (!%p1921_p6)
}
  0x4d   :  { %s1925_s2 = scalar_lea.vmem %s80_s20, 512  ;;  %p1930_p8 = scmp.lt.s32.totalorder %s80_s20, %s80_s20 }
  0x4e   :  { %p1926_p7 = scmp.ne.s32.totalorder %s80_s20, %s1925_s2  ;;  %p1931_p9 = scmp.lt.s32.totalorder %s1925_s2, %s1925_s2 }
  0x50   :  { %p1932_p10 = por %p1931_p9, %p1930_p8 }
  0x52   :  { %p1933_p11 = pnand %p1932_p10, %p1926_p7 }
  0x54   :  { %1936 = shalt.err (!%p1933_p11)
}
  0x55   :  { %85 = dma.hbm_to_vmem [thread:$0]  %s2405_s6, 512, %s80_s20, [#allocation10], %s1993_s15, %s1993_s15, %s1994_s16  }
  0x56   :  { %s1937_s17 = scalar_lea.hbm %s2407_s8, 512 }
  0x57   :  { %p1938_p12 = scmp.ne.s32.totalorder %s2407_s8, %s1937_s17  ;;  %p1941_p13 = scmp.lt.u32.totalorder %s1937_s17, %s2407_s8 }
  0x59   :  { %p1943_p0 = pnand %p1941_p13, %p1938_p12 }
  0x5b   :  { %1946 = shalt.err (!%p1943_p0)
}
  0x5c   :  { %s1947_s21 = scalar_lea.vmem %s2144_s23, 512  ;;  %p1952_p2 = scmp.lt.s32.totalorder %s2144_s23, %s2144_s23 }
  0x5d   :  { %p1948_p1 = scmp.ne.s32.totalorder %s2144_s23, %s1947_s21  ;;  %p1953_p3 = scmp.lt.s32.totalorder %s1947_s21, %s1947_s21 }
  0x5f   :  { %p1954_p4 = por %p1953_p3, %p1952_p2 }
  0x61   :  { %p1955_p5 = pnand %p1954_p4, %p1948_p1 }
  0x63   :  { %1958 = shalt.err (!%p1955_p5)
}
  0x64   :  { %99 = dma.hbm_to_vmem [thread:$0]  %s2407_s8, 512, %s2144_s23, [#allocation13], %s1993_s15, %s1993_s15, %s1994_s16  }
  0x65   :  { %1981 = dma.done.wait [#allocation4], 256  }
  0x66   :  { %1982 = vsyncadd [#allocation4], 4294967040 }
  0x67   :  { %1983 = dma.done.wait [#allocation7], 768  }
  0x68   :  { %1984 = vsyncadd [#allocation7], 4294966528 }
  0x69   :  { %1985 = dma.done.wait [#allocation10], 1024  }
  0x6a   :  { %1986 = vsyncadd [#allocation10], 4294966272 }
  0x6b   :  { %1987 = dma.done.wait [#allocation13], 512  }
  0x6c   :  { %1988 = vsyncadd [#allocation13], 4294966784  ;;  %vm137_vm0 = vcmask 261120   ;;  %v231_v1 = vld [vmem:[#allocation9] sm:$0xff]  ;;  %v232_v2 = vld [vmem:[#allocation9 + $0x8] sm:$0xff]  ;;  %vm429_vm2 = vcmask 64512  }
  0x6d   :  { %vm2183_vm1 = vmpackc.low %vm137_vm0, %vm137_vm0  ;;  %v126_v3 = vld [vmem:[#allocation8] sm:$0xff]  ;;  %v1671_v4 = vpack.c.bf16 %v232_v2, %v231_v1  ;;  %v127_v5 = vld [vmem:[#allocation8 + $0x8] sm:$0xff]  ;;  %vm521_vm4 = vcmask 130048   ;;  %s2002_s27 = smov 16   ;;  %s2003_s28 = smov 24   ;;  %vm841_vm5 = vcmask 130112  }
  0x6e   :  { %v233_v6 = vld [vmem:[#allocation9 + $0x10] sm:$0xff]  ;;  %v234_v7 = vld [vmem:[#allocation9 + $0x18] sm:$0xff]  ;;  %v1659_v8 = vpack.c.bf16 %v127_v5, %v126_v3  ;;  %v2187_v10 = vld [vmem:[#allocation3] sm:$0xff]  ;;  %vm1056_vm6 = vcmask 195712   ;;  %vm1271_vm7 = vcmask 261312   ;;  %s2004_s13 = smov [#allocation14]  }
  0x6f   :  { %v1677_v9 = vpack.c.bf16 %v234_v7, %v233_v6  ;;  %v128_v11 = vld [vmem:[#allocation8 + $0x10] sm:$0xff]  ;;  %v129_v12 = vld [vmem:[#allocation8 + $0x18] sm:$0xff]  ;;  %1673 = vmatprep.subr.msk.bf16.mxu1 %vm2183_vm1, %v1671_v4  ;;  %1578 = vmatprep.mubr.msk.f32.mxu1 %vm137_vm0, %v2187_v10  ;;  %v2209_v14 = vld [vmem:[#allocation3 + $0x8] sm:$0xff]  ;;  %s1434_s17 = sshll.u32 %s2004_s13, 4  ;;  %s1435_s17 = int_to_ptr.vmem [resolvable:$true] %s1434_s17 }
  0x70   :  { %v1665_v13 = vpack.c.bf16 %v129_v12, %v128_v11  ;;  %1676 = vmatpush3.bf16.xpose.msk.msra.mxu1 %vm2183_vm1, %v1671_v4  ;;  %1661 = vmatprep.subr.msk.bf16.mxu0 %vm2183_vm1, %v1659_v8  ;;  %v329_v15 = vld [vmem:[#allocation11] sm:$0xff]  ;;  %v330_v16 = vld [vmem:[#allocation11 + $0x8] sm:$0xff]  ;;  %v331_v17 = vld [vmem:[#allocation11 + $0x10] sm:$0xff]  ;;  %s1959_s18 = scalar_lea.vmem %s1435_s17, 256  ;;  %p1964_p7 = scmp.lt.s32.totalorder %s1435_s17, %s1435_s17 }
  0x71   :  { %1679 = vmatprep.subr.msk.bf16.mxu1 %vm2183_vm1, %v1677_v9  ;;  %1664 = vmatpush3.bf16.xpose.msk.msra.mxu0 %vm2183_vm1, %v1659_v8  ;;  %v1683_v18 = vpack.c.bf16 %v330_v16, %v329_v15  ;;  %v332_v19 = vld [vmem:[#allocation11 + $0x18] sm:$0xff]  ;;  %v1456_v20 = vld [vmem:[%s2404_s5] ss:$0 sm:$0xff]  ;;  %vm2231_vm3 = vmpackc.low %vm429_vm2, %vm429_vm2  ;;  %s2000_s5 = smov 120   ;;  %p1960_p6 = scmp.ne.s32.totalorder %s1435_s17, %s1959_s18 }
  0x72   :  { %1667 = vmatprep.subr.msk.bf16.mxu0 %vm2183_vm1, %v1665_v13  ;;  %1567 = vmatprep.mubr.msk.f32.mxu0 %vm137_vm0, %v2187_v10  ;;  %v1689_v21 = vpack.c.bf16 %v332_v19, %v331_v17  ;;  %v1449_v23 = vld [vmem:[%s2402_s3] ss:$0 sm:$0xff]  ;;  %s1999_s3 = smov 112   ;;  %v2259_v39 = vld [vmem:[#allocation6 + $0x8] sm:$0xff]  ;;  %p1965_p8 = scmp.lt.s32.totalorder %s1959_s18, %s1959_s18 }
  0x73   :  { %v2257_v36 = vld [vmem:[#allocation6] sm:$0xff] }
  0x74   :  { %v1463_v45 = vld [vmem:[%s2406_s7] ss:$0 sm:$0xff]  ;;  %s2001_s7 = smov 104   ;;  %p1966_p9 = por %p1965_p8, %p1964_p7 }
  0x76   :  { %p1967_p10 = pnand %p1966_p9, %p1960_p6 }
  0x78   :  { %1682 = vmatpush3.bf16.xpose.msk.msra.mxu1 %vm2183_vm1, %v1677_v9 }
  0x79   :  { %1670 = vmatpush3.bf16.xpose.msk.msra.mxu0 %vm2183_vm1, %v1665_v13 }
  0x7a   :  { %1685 = vmatprep.subr.msk.bf16.mxu0 %vm2183_vm1, %v1683_v18 }
  0x7f   :  { %1579 = vmatmul.mubr.msk.f32.vlgmr.msra.gmra.mrb[0].mxu1 %vm137_vm0, %v2209_v14 }
  0x80   :  { %1568 = vmatmul.mubr.msk.f32.vlgmr.msra.gmra.mrb[0].mxu0 %vm137_vm0, %v2209_v14 }
  0x81   :  { %1589 = vmatprep.mubr.msk.f32.mxu0 %vm137_vm0, %v2187_v10  ;;  %1688 = vmatpush3.bf16.xpose.msk.msra.mxu0 %vm2183_vm1, %v1683_v18 }
  0x82   :  { %1691 = vmatprep.subr.msk.bf16.mxu0 %vm2183_vm1, %v1689_v21 }
  0x89   :  { %1694 = vmatpush3.bf16.xpose.msk.msra.mxu0 %vm2183_vm1, %v1689_v21 }
  0x90   :  { %1590 = vmatmul.mubr.msk.f32.vlgmr.msra.gmra.mrb[2].mxu0 %vm137_vm0, %v2209_v14 }
 0x152   :  { %v1580_v22 = vpop.f32.mrb[0].mxu1 }
 0x153   :  { %v326_v24 = vadd.f32 %v1580_v22, %v1456_v20  ;;  %v320_v25 = vpop.f32.mrb[1].mxu1  ;;  %v1569_v26 = vpop.f32.mrb[0].mxu0 }
 0x154   :  { %v321_v27 = vadd.f32 %v1456_v20, %v320_v25  ;;  %v222_v28 = vpop.f32.mrb[1].mxu0  ;;  %v2251_v33 = vadd.f32 %v1569_v26, %v1449_v23 }
 0x155   :  { %v2235_v30 = vadd.f32 %v1449_v23, %v222_v28 }
 0x156   :  { %v2237_v31 = vpack.i.bf16 %v326_v24, %v321_v27  ;;  %v1695_v32 = vpack.c.bf16 %v326_v24, %v321_v27 }
 0x157   :  { %1596 = vmatprep.mubr.msk.f32.mxu1 %vm429_vm2, %v2235_v30 }
 0x158   :  { %1767 = vrot.lane.b32.xlu1 %v2237_v31, %s1999_s3  ;;  %1697 = vmatprep.subr.msk.bf16.mxu1 %vm2231_vm3, %v1695_v32 }
 0x159   :  { %1700 = vmatpush3.bf16.xpose.msk.msra.mxu1 %vm2231_vm3, %v1695_v32 }
 0x15c   :  { %627 = vrot.lane.b32.xlu1 %v2235_v30, %s2000_s5 }
 0x160   :  { %1597 = vmatmul.mubr.msk.f32.vlgmr.msra.gmra.mrb[2].mxu1 %vm429_vm2, %v2251_v33 }
 0x163   :  { %v1591_v44 = vpop.f32.mrb[2].mxu0 }
 0x164   :  { %v418_v46 = vpop.f32.mrb[3].mxu0  ;;  %v2268_v47 = vadd.f32 %v1591_v44, %v1463_v45 }
 0x165   :  { %v2270_v48 = vadd.f32 %v1463_v45, %v418_v46 }
 0x167   :  { %v1701_v49 = vpack.c.bf16 %v2268_v47, %v2270_v48  ;;  %v2316_v45 = vpack.i.bf16 %v2268_v47, %v2270_v48 }
 0x169   :  { %1702 = vmatprep.subr.bf16.mxu1 %v1701_v49 }
 0x16a   :  { %1704 = vmatpush3.bf16.msra.mxu1 %v1701_v49 }
 0x1ca   :  { %v1768_v1 = vpop.permute.xlu1 %1767 }
 0x1cb   :  { %v1770_v7 = vunpack.i.h.bf16 %v1768_v1  ;;  %v1769_v8 = vunpack.i.l.bf16 %v1768_v1 }
 0x1cd   :  { %v1715_v12 = vpack.c.bf16 %v1770_v7, %v1769_v8 }
 0x1ce   :  { %v628_v2 = vpop.permute.xlu1 %627 }
 0x233   :  { %v1598_v34 = vpop.f32.mrb[2].mxu1 }
 0x234   :  { %v508_v35 = vpop.f32.mrb[3].mxu1  ;;  %v518_v37 = vmul.f32 0.35355338, %v1598_v34 }
 0x235   :  { %v517_v38 = vmul.f32 0.35355338, %v508_v35 }
 0x236   :  { %v520_v42 = vadd.f32 %v518_v37, %v2259_v39 }
 0x237   :  { %v519_v40 = vadd.f32 %v517_v38, %v2257_v36 }
 0x238   :  { %v525_v43 = vsel %vm521_vm4, %v520_v42, -inf }
 0x239   :  { %v522_v41 = vsel %vm521_vm4, %v519_v40, -inf }
 0x23a   :  { %523 = vmax.xlane.f32.xlu0 %v522_v41 }
 0x23e   :  { %526 = vmax.xlane.f32.xlu0 %v525_v43 }
 0x254   :  { %1762 = vrot.lane.b32.xlu0 %v2237_v31, %s2000_s5 }
 0x258   :  { %844 = vrot.lane.b32.xlu0 %v2235_v30, %s1999_s3 }
 0x2c7   :  { %v524_v50 = vpop.xlane.xlu0 %523 }
 0x2c8   :  { %v528_v51 = vsub.f32 %v519_v40, %v524_v50 }
 0x2ca   :  { %v530_v54 = vmul.f32 1.442695, %v528_v51 }
 0x2cb   :  { %v527_v52 = vpop.xlane.xlu0 %526 }
 0x2cc   :  { %v529_v53 = vsub.f32 %v520_v42, %v527_v52 }
 0x2ce   :  { %v532_v55 = vmul.f32 1.442695, %v529_v53 }
 0x2cf   :  { %v1763_v56 = vpop.permute.xlu0 %1762 }
 0x2d0   :  { %1791 = vpow2.f32 %v532_v55  ;;  %v1765_v57 = vunpack.i.h.bf16 %v1763_v56  ;;  %v1764_v58 = vunpack.i.l.bf16 %v1763_v56 }
 0x2d1   :  { %1793 = vpow2.f32 %v530_v54 }
 0x2d2   :  { %v1705_v59 = vpack.c.bf16 %v1765_v57, %v1764_v58 }
 0x2d3   :  { %v845_v15 = vpop.permute.xlu0 %844 }
 0x2d4   :  { %1707 = vmatprep.subr.msk.bf16.mxu1 %vm2231_vm3, %v1705_v59 }
 0x2da   :  { %v1792_v60 = vpop.eup %1791 }
 0x2db   :  { %v537_v61 = vsel %vm521_vm4, %v1792_v60, 0.0  ;;  %v1794_v62 = vpop.eup %1793 }
 0x2dc   :  { %538 = vadd.xlane.f32.xlu1 %v537_v61  ;;  %v534_v63 = vsel %vm521_vm4, %v1794_v62, 0.0 }
 0x2e0   :  { %535 = vadd.xlane.f32.xlu1 %v534_v63 }
 0x2f1   :  { %629 = vrot.lane.b32.xlu1 %v2251_v33, %s2000_s5 }
 0x2f5   :  { %846 = vrot.lane.b32.xlu1 %v2251_v33, %s1999_s3 }
 0x369   :  { %v539_v3 = vpop.xlane.xlu1 %538 }
 0x36a   :  { %1795 = vrcp.f32 %v539_v3 }
 0x36d   :  { %v536_v4 = vpop.xlane.xlu1 %535 }
 0x36e   :  { %1797 = vrcp.f32 %v536_v4 }
 0x371   :  { %v630_v13 = vpop.permute.xlu1 %629 }
 0x374   :  { %v1796_v5 = vpop.eup %1795 }
 0x375   :  { %v543_v11 = vmul.f32 %v1796_v5, %v1792_v60  ;;  %v847_v16 = vpop.permute.xlu1 %846 }
 0x378   :  { %v1798_v6 = vpop.eup %1797 }
 0x379   :  { %v542_v9 = vmul.f32 %v1798_v6, %v1794_v62 }
 0x37b   :  { %1603 = vmatprep.mubr.msk.f32.mxu1 %vm521_vm4, %v542_v9 }
 0x37c   :  { %1604 = vmatmul.mubr.msk.f32.vlgmr.msra.gmra.mrb[4].mxu1 %vm521_vm4, %v543_v11 }
 0x37d   :  { %1710 = vmatpush3.bf16.xpose.msk.msra.mxu1 %vm2231_vm3, %v1705_v59  ;;  %1610 = vmatprep.mubr.msk.f32.mxu1 %vm429_vm2, %v628_v2 }
 0x37e   :  { %1717 = vmatprep.subr.msk.bf16.mxu1 %vm2231_vm3, %v1715_v12 }
 0x384   :  { %1611 = vmatmul.mubr.msk.f32.vlgmr.msra.gmra.mrb[6].mxu1 %vm429_vm2, %v630_v13 }
 0x385   :  { %1720 = vmatpush3.bf16.xpose.msk.msra.mxu1 %vm2231_vm3, %v1715_v12  ;;  %1624 = vmatprep.mubr.msk.f32.mxu1 %vm429_vm2, %v845_v15 }
 0x38c   :  { %1625 = vmatmul.mubr.msk.f32.vlgmr.msra.gmra.mrb[8].mxu1 %vm429_vm2, %v847_v16 }
 0x44f   :  { %v1605_v17 = vpop.f32.mrb[4].mxu1 }
 0x450   :  { %626 = vst.msk [vmem:[#allocation2 + $0x8] sm:$0xff] %vm429_vm2, %v1605_v17  ;;  %v616_v18 = vpop.f32.mrb[5].mxu1 }
 0x451   :  { %625 = vst.msk [vmem:[#allocation2] sm:$0xff] %vm429_vm2, %v616_v18 }
 0x457   :  { %v1612_v19 = vpop.f32.mrb[6].mxu1 }
 0x458   :  { %v709_v20 = vpop.f32.mrb[7].mxu1  ;;  %v719_v32 = vmul.f32 0.35355338, %v1612_v19 }
 0x459   :  { %v718_v54 = vmul.f32 0.35355338, %v709_v20 }
 0x45a   :  { %v721_v34 = vadd.f32 %v719_v32, %v2259_v39 }
 0x45b   :  { %v720_v55 = vadd.f32 %v718_v54, %v2257_v36 }
 0x45c   :  { %v725_v35 = vsel %vm521_vm4, %v721_v34, -inf }
 0x45d   :  { %v722_v56 = vsel %vm521_vm4, %v720_v55, -inf }
 0x45f   :  { %v1626_v21 = vpop.f32.mrb[8].mxu1 }
 0x460   :  { %v936_v22 = vmul.f32 0.35355338, %v1626_v21  ;;  %v926_v23 = vpop.f32.mrb[9].mxu1 }
 0x461   :  { %v935_v24 = vmul.f32 0.35355338, %v926_v23 }
 0x462   :  { %v938_v25 = vadd.f32 %v936_v22, %v2259_v39 }
 0x463   :  { %v937_v26 = vadd.f32 %v935_v24, %v2257_v36 }
 0x464   :  { %v942_v27 = vsel %vm521_vm4, %v938_v25, -inf }
 0x465   :  { %943 = vmax.xlane.f32.xlu1 %v942_v27  ;;  %v939_v28 = vsel %vm521_vm4, %v937_v26, -inf }
 0x466   :  { %940 = vmax.xlane.f32.xlu0 %v939_v28 }
 0x476   :  { %1777 = vrot.lane.b32.xlu1 %v2237_v31, %s2001_s7 }
 0x47a   :  { %1059 = vrot.lane.b32.xlu1 %v2235_v30, %s2001_s7 }
 0x47e   :  { %1061 = vrot.lane.b32.xlu1 %v2251_v33, %s2001_s7 }
 0x4a2   :  { %726 = vmax.xlane.f32.xlu1 %v725_v35 }
 0x4f2   :  { %v944_v37 = vpop.xlane.xlu1 %943 }
 0x4f3   :  { %v946_v38 = vsub.f32 %v938_v25, %v944_v37  ;;  %v941_v40 = vpop.xlane.xlu0 %940 }
 0x4f4   :  { %v945_v41 = vsub.f32 %v937_v26, %v941_v40 }
 0x4f5   :  { %v949_v42 = vmul.f32 1.442695, %v946_v38 }
 0x4f6   :  { %v947_v43 = vmul.f32 1.442695, %v945_v41  ;;  %v1778_v46 = vpop.permute.xlu1 %1777 }
 0x4f7   :  { %1799 = vpow2.f32 %v949_v42  ;;  %v1780_v60 = vunpack.i.h.bf16 %v1778_v46  ;;  %v1779_v61 = vunpack.i.l.bf16 %v1778_v46 }
 0x4f8   :  { %1801 = vpow2.f32 %v947_v43 }
 0x4f9   :  { %v1725_v2 = vpack.c.bf16 %v1780_v60, %v1779_v61 }
 0x4fa   :  { %v1060_v49 = vpop.permute.xlu1 %1059 }
 0x4fe   :  { %v1062_v50 = vpop.permute.xlu1 %1061 }
 0x501   :  { %v1800_v31 = vpop.eup %1799 }
 0x502   :  { %v954_v30 = vsel %vm521_vm4, %v1800_v31, 0.0  ;;  %v1802_v44 = vpop.eup %1801 }
 0x503   :  { %955 = vadd.xlane.f32.xlu0 %v954_v30  ;;  %v951_v33 = vsel %vm521_vm4, %v1802_v44, 0.0 }
 0x507   :  { %952 = vadd.xlane.f32.xlu0 %v951_v33 }
 0x51d   :  { %1772 = vrot.lane.b32.xlu0 %v2316_v45, %s1999_s3 }
 0x52f   :  { %v727_v51 = vpop.xlane.xlu1 %726 }
 0x530   :  { %v729_v52 = vsub.f32 %v721_v34, %v727_v51 }
 0x532   :  { %v732_v53 = vmul.f32 1.442695, %v729_v52 }
 0x534   :  { %1803 = vpow2.f32 %v732_v53 }
 0x53c   :  { %723 = vmax.xlane.f32.xlu0 %v722_v56  ;;  %v1276_v56 = vld [vmem:[#allocation12] sm:$0xff] }
 0x53e   :  { %v2322_v57 = vpop.eup %1803 }
 0x53f   :  { %v737_v47 = vsel %vm521_vm4, %v2322_v57, 0.0 }
 0x540   :  { %738 = vadd.xlane.f32.xlu1 %v737_v47  ;;  %v1277_v47 = vld [vmem:[#allocation12 + $0x8] sm:$0xff] }
 0x590   :  { %v956_v48 = vpop.xlane.xlu0 %955 }
 0x591   :  { %1805 = vrcp.f32 %v956_v48  ;;  %v1735_v48 = vpack.c.bf16 %v1277_v47, %v1276_v56 }
 0x594   :  { %v953_v58 = vpop.xlane.xlu0 %952 }
 0x595   :  { %1807 = vrcp.f32 %v953_v58  ;;  %v1279_v58 = vld [vmem:[#allocation12 + $0x18] sm:$0xff] }
 0x598   :  { %v1773_v59 = vpop.permute.xlu0 %1772 }
 0x599   :  { %v1775_v62 = vunpack.i.h.bf16 %v1773_v59  ;;  %v1774_v63 = vunpack.i.l.bf16 %v1773_v59 }
 0x59b   :  { %v1721_v1 = vpack.c.bf16 %v1775_v62, %v1774_v63  ;;  %v1806_v3 = vpop.eup %1805 }
 0x59c   :  { %v960_v6 = vmul.f32 %v1806_v3, %v1800_v31 }
 0x59d   :  { %1722 = vmatprep.subr.bf16.mxu1 %v1721_v1 }
 0x59e   :  { %1724 = vmatpush3.bf16.msra.mxu1 %v1721_v1 }
 0x59f   :  { %v1808_v4 = vpop.eup %1807  ;;  %1727 = vmatprep.subr.msk.bf16.mxu1 %vm2231_vm3, %v1725_v2 }
 0x5a0   :  { %v959_v5 = vmul.f32 %v1808_v4, %v1802_v44 }
 0x5a2   :  { %1631 = vmatprep.mubr.msk.f32.mxu1 %vm521_vm4, %v959_v5 }
 0x5a3   :  { %1632 = vmatmul.mubr.msk.f32.vlgmr.msra.gmra.mrb[10].mxu1 %vm521_vm4, %v960_v6 }
 0x5a4   :  { %1638 = vmatprep.mubr.msk.f32.mxu1 %vm429_vm2, %v1060_v49 }
 0x5a7   :  { %1730 = vmatpush3.bf16.xpose.msk.msra.mxu1 %vm2231_vm3, %v1725_v2 }
 0x5ae   :  { %1639 = vmatmul.mubr.msk.f32.vlgmr.msra.gmra.mrb[12].mxu1 %vm429_vm2, %v1062_v50 }
 0x5c9   :  { %v724_v8 = vpop.xlane.xlu0 %723 }
 0x5ca   :  { %v728_v11 = vsub.f32 %v720_v55, %v724_v8  ;;  %v1494_v8 = vld [vmem:[%s2408_s9] ss:$0 sm:$0xff] }
 0x5cc   :  { %v730_v12 = vmul.f32 1.442695, %v728_v11 }
 0x5cd   :  { %v739_v40 = vpop.xlane.xlu1 %738 }
 0x5ce   :  { %1809 = vpow2.f32 %v730_v12 }
 0x5d8   :  { %v1810_v21 = vpop.eup %1809 }
 0x5d9   :  { %v734_v22 = vsel %vm521_vm4, %v1810_v21, 0.0 }
 0x676   :  { %v2334_v7 = vpop.f32.mrb[10].mxu1 }
 0x677   :  { %v1039_v9 = vpop.f32.mrb[11].mxu1 }
 0x681   :  { %v1640_v13 = vpop.f32.mrb[12].mxu1 }
 0x682   :  { %v1141_v15 = vpop.f32.mrb[13].mxu1  ;;  %v1151_v16 = vmul.f32 0.35355338, %v1640_v13 }
 0x683   :  { %v1150_v17 = vmul.f32 0.35355338, %v1141_v15 }
 0x684   :  { %v1153_v29 = vadd.f32 %v1151_v16, %v2259_v39 }
 0x685   :  { %v1152_v18 = vadd.f32 %v1150_v17, %v2257_v36 }
 0x686   :  { %v1157_v20 = vsel %vm521_vm4, %v1153_v29, -inf }
 0x687   :  { %v1154_v19 = vsel %vm521_vm4, %v1152_v18, -inf }
 0x688   :  { %1155 = vmax.xlane.f32.xlu0 %v1154_v19 }
 0x68c   :  { %1158 = vmax.xlane.f32.xlu0 %v1157_v20 }
 0x690   :  { %735 = vadd.xlane.f32.xlu0 %v734_v22 }
 0x715   :  { %v1156_v23 = vpop.xlane.xlu0 %1155 }
 0x716   :  { %v1160_v24 = vsub.f32 %v1152_v18, %v1156_v23 }
 0x718   :  { %v1162_v25 = vmul.f32 1.442695, %v1160_v24 }
 0x719   :  { %v1159_v26 = vpop.xlane.xlu0 %1158 }
 0x71a   :  { %1811 = vpow2.f32 %v1162_v25  ;;  %v1161_v27 = vsub.f32 %v1153_v29, %v1159_v26 }
 0x71c   :  { %v1164_v28 = vmul.f32 1.442695, %v1161_v27 }
 0x71d   :  { %v736_v36 = vpop.xlane.xlu0 %735 }
 0x71e   :  { %1813 = vpow2.f32 %v1164_v28 }
 0x71f   :  { %1815 = vrcp.f32 %v736_v36 }
 0x720   :  { %1817 = vrcp.f32 %v739_v40 }
 0x724   :  { %v1812_v32 = vpop.eup %1811 }
 0x725   :  { %v1166_v39 = vsel %vm521_vm4, %v1812_v32, 0.0 }
 0x726   :  { %1167 = vadd.xlane.f32.xlu0 %v1166_v39 }
 0x728   :  { %v1814_v34 = vpop.eup %1813 }
 0x729   :  { %v1816_v35 = vpop.eup %1815  ;;  %v1169_v37 = vsel %vm521_vm4, %v1814_v34, 0.0 }
 0x72a   :  { %1170 = vadd.xlane.f32.xlu1 %v1169_v37  ;;  %v742_v38 = vmul.f32 %v1816_v35, %v1810_v21  ;;  %v1818_v33 = vpop.eup %1817  ;;  %v1501_v35 = vld [vmem:[%s2409_s10] ss:$0 sm:$0xff] }
 0x72b   :  { %v743_v51 = vmul.f32 %v1818_v33, %v2322_v57  ;;  %v1278_v57 = vld [vmem:[#allocation12 + $0x10] sm:$0xff] }
 0x72c   :  { %1617 = vmatprep.mubr.msk.f32.mxu0 %vm521_vm4, %v742_v38  ;;  %v1741_v60 = vpack.c.bf16 %v1279_v58, %v1278_v57  ;;  %v1502_v38 = vld [vmem:[%s2410_s11] ss:$0 sm:$0xff] }
 0x73b   :  { %1787 = vrot.lane.b32.xlu1 %v2316_v45, %s2001_s7 }
 0x73c   :  { %1782 = vrot.lane.b32.xlu0 %v2316_v45, %s2000_s5 }
 0x740   :  { %1050 = vrot.lane.b32.xlu0 %v1039_v9, %s2002_s27 }
 0x7b3   :  { %v1168_v41 = vpop.xlane.xlu0 %1167 }
 0x7b4   :  { %1819 = vrcp.f32 %v1168_v41 }
 0x7b7   :  { %v1171_v42 = vpop.xlane.xlu1 %1170  ;;  %v1783_v43 = vpop.permute.xlu0 %1782 }
 0x7b8   :  { %1821 = vrcp.f32 %v1171_v42  ;;  %v1785_v31 = vunpack.i.h.bf16 %v1783_v43  ;;  %v1784_v30 = vunpack.i.l.bf16 %v1783_v43 }
 0x7ba   :  { %v1711_v44 = vpack.c.bf16 %v1785_v31, %v1784_v30 }
 0x7bb   :  { %v1788_v46 = vpop.permute.xlu1 %1787  ;;  %v1051_v2 = vpop.permute.xlu0 %1050 }
 0x7bc   :  { %v1790_v49 = vunpack.i.h.bf16 %v1788_v46  ;;  %v1789_v50 = vunpack.i.l.bf16 %v1788_v46  ;;  %1712 = vmatprep.subr.bf16.mxu0 %v1711_v44 }
 0x7bd   :  { %1714 = vmatpush3.bf16.msra.mxu0 %v1711_v44 }
 0x7be   :  { %v1820_v45 = vpop.eup %1819  ;;  %v1731_v52 = vpack.c.bf16 %v1790_v49, %v1789_v50 }
 0x7bf   :  { %v1174_v53 = vmul.f32 %v1820_v45, %v1812_v32 }
 0x7c0   :  { %1618 = vmatmul.mubr.msk.f32.vlgmr.msra.gmra.mrb[4].mxu0 %vm521_vm4, %v743_v51  ;;  %1732 = vmatprep.subr.bf16.mxu0 %v1731_v52 }
 0x7c1   :  { %1734 = vmatpush3.bf16.msra.mxu0 %v1731_v52  ;;  %1645 = vmatprep.mubr.msk.f32.mxu0 %vm521_vm4, %v1174_v53 }
 0x7c2   :  { %v1822_v54 = vpop.eup %1821  ;;  %1737 = vmatprep.subr.msk.bf16.mxu0 %vm2183_vm1, %v1735_v48 }
 0x7c3   :  { %v1175_v55 = vmul.f32 %v1822_v54, %v1814_v34 }
 0x7c5   :  { %1646 = vmatmul.mubr.msk.f32.vlgmr.msra.gmra.mrb[6].mxu0 %vm521_vm4, %v1175_v55 }
 0x7ca   :  { %1740 = vmatpush3.bf16.xpose.msk.msra.mxu0 %vm2183_vm1, %v1735_v48 }
 0x7cb   :  { %1743 = vmatprep.subr.msk.bf16.mxu0 %vm2183_vm1, %v1741_v60 }
 0x7d2   :  { %1746 = vmatpush3.bf16.xpose.msk.msra.mxu0 %vm2183_vm1, %v1741_v60 }
 0x893   :  { %v1619_v59 = vpop.f32.mrb[4].mxu0 }
 0x894   :  { %v824_v61 = vpop.f32.mrb[5].mxu0 }
 0x895   :  { %835 = vrot.lane.b32.xlu1 %v824_v61, %s1994_s16 }
 0x898   :  { %v1647_v62 = vpop.f32.mrb[6].mxu0 }
 0x899   :  { %837 = vrot.lane.b32.xlu1 %v1619_v59, %s1994_s16  ;;  %v1254_v63 = vpop.f32.mrb[7].mxu0 }
 0x89a   :  { %1265 = vrot.lane.b32.xlu0 %v1254_v63, %s2003_s28 }
 0x89d   :  { %1052 = vrot.lane.b32.xlu1 %v2334_v7, %s2002_s27 }
 0x8a1   :  { %1267 = vrot.lane.b32.xlu1 %v1647_v62, %s2003_s28 }
 0x907   :  { %v836_v1 = vpop.permute.xlu1 %835 }
 0x908   :  { %842 = vst.msk [vmem:[#allocation2] sm:$0xff] %vm841_vm5, %v836_v1 }
 0x909   :  { %1057 = vst.msk [vmem:[#allocation2] sm:$0xff] %vm1056_vm6, %v1051_v2 }
 0x90b   :  { %v838_v3 = vpop.permute.xlu1 %837 }
 0x90c   :  { %843 = vst.msk [vmem:[#allocation2 + $0x8] sm:$0xff] %vm841_vm5, %v838_v3  ;;  %v1266_v0 = vpop.permute.xlu0 %1265 }
 0x90d   :  { %1272 = vst.msk [vmem:[#allocation2] sm:$0xff] %vm1271_vm7, %v1266_v0 }
 0x90f   :  { %v1053_v4 = vpop.permute.xlu1 %1052 }
 0x910   :  { %1058 = vst.msk [vmem:[#allocation2 + $0x8] sm:$0xff] %vm1056_vm6, %v1053_v4 }
 0x913   :  { %v1268_v5 = vpop.permute.xlu1 %1267 }
 0x914   :  { %1273 = vst.msk [vmem:[#allocation2 + $0x8] sm:$0xff] %vm1271_vm7, %v1268_v5  ;;  %v1274_v6 = vld [vmem:[#allocation2] sm:$0xff] }
 0x915   :  { %1656 = vmatprep.mubr.msk.f32.mxu0 %vm137_vm0, %v1274_v6 }
 0x91b   :  { %v1275_v7 = vld [vmem:[#allocation2 + $0x8] sm:$0xff] }
 0x91c   :  { %1657 = vmatmul.mubr.msk.f32.vlgmr.msra.gmra.mrb[8].mxu0 %vm137_vm0, %v1275_v7 }
 0x9ef   :  { %v1658_v9 = vpop.f32.mrb[8].mxu0 }
 0x9f0   :  { %v1377_v11 = vadd.f32 %v1658_v9, %v1494_v8  ;;  %v1371_v12 = vpop.f32.mrb[9].mxu0 }
 0x9f1   :  { %v1372_v13 = vadd.f32 %v1494_v8, %v1371_v12 }
 0x9f2   :  { %v1381_v15 = vadd.f32 %v1377_v11, %v2209_v14 }
 0x9f3   :  { %v1380_v16 = vadd.f32 %v1372_v13, %v2187_v10 }
 0x9f4   :  { %v1385_v17 = vsel %vm137_vm0, %v1381_v15, 0.0 }
 0x9f5   :  { %1386 = vadd.xlane.f32.xlu1 %v1385_v17  ;;  %v1382_v18 = vsel %vm137_vm0, %v1380_v16, 0.0 }
 0x9f6   :  { %1383 = vadd.xlane.f32.xlu0 %v1382_v18 }
 0xa82   :  { %v1387_v19 = vpop.xlane.xlu1 %1386 }
 0xa83   :  { %v1390_v29 = vmul.f32 0.03125, %v1387_v19  ;;  %v1384_v20 = vpop.xlane.xlu0 %1383 }
 0xa84   :  { %v1389_v21 = vmul.f32 0.03125, %v1384_v20 }
 0xa85   :  { %v1392_v22 = vsub.f32 %v1381_v15, %v1390_v29 }
 0xa86   :  { %v1391_v23 = vsub.f32 %v1380_v16, %v1389_v21 }
 0xa87   :  { %v1394_v26 = vmul.f32 %v1392_v22, %v1392_v22 }
 0xa88   :  { %v1393_v24 = vmul.f32 %v1391_v23, %v1391_v23 }
 0xa89   :  { %v1398_v14 = vsel %vm137_vm0, %v1394_v26, 0.0 }
 0xa8a   :  { %v1395_v25 = vsel %vm137_vm0, %v1393_v24, 0.0 }
 0xa8b   :  { %1396 = vadd.xlane.f32.xlu0 %v1395_v25 }
 0xa8f   :  { %1399 = vadd.xlane.f32.xlu0 %v1398_v14 }
 0xb18   :  { %v1397_v10 = vpop.xlane.xlu0 %1396 }
 0xb19   :  { %v1401_v27 = vmul.f32 0.03125, %v1397_v10 }
 0xb1b   :  { %v1403_v28 = vadd.f32 1e-12, %v1401_v27 }
 0xb1c   :  { %v1400_v36 = vpop.xlane.xlu0 %1399 }
 0xb1d   :  { %1823 = vrsqrt.f32 %v1403_v28  ;;  %v1402_v32 = vmul.f32 0.03125, %v1400_v36 }
 0xb1f   :  { %v1404_v39 = vadd.f32 1e-12, %v1402_v32 }
 0xb21   :  { %1825 = vrsqrt.f32 %v1404_v39 }
 0xb27   :  { %v1824_v34 = vpop.eup %1823 }
 0xb28   :  { %v1407_v37 = vmul.f32 %v1824_v34, %v1391_v23 }
 0xb2a   :  { %v1416_v40 = vmul.f32 %v1501_v35, %v1407_v37 }
 0xb2b   :  { %v1826_v41 = vpop.eup %1825 }
 0xb2c   :  { %v1408_v42 = vmul.f32 %v1826_v41, %v1392_v22  ;;  %v1425_v43 = vadd.f32 %v1502_v38, %v1416_v40 }
 0xb2e   :  { %v1417_v31 = vmul.f32 %v1501_v35, %v1408_v42  ;;  %1427 = vst.msk [vmem:[#allocation14] sm:$0xff] %vm137_vm0, %v1425_v43 }
 0xb30   :  { %v1426_v30 = vadd.f32 %v1502_v38, %v1417_v31 }
 0xb32   :  { %1428 = vst.msk [vmem:[#allocation14 + $0x8] sm:$0xff] %vm137_vm0, %v1426_v30 }
 0xb33   :  { %1970 = shalt.err (!%p1967_p10)
}
 0xb34   :  { %s1971_s0 = scalar_lea.hbm %s2411_s12, 256 }
 0xb35   :  { %p1972_p11 = scmp.ne.s32.totalorder %s2411_s12, %s1971_s0  ;;  %p1975_p12 = scmp.lt.u32.totalorder %s1971_s0, %s2411_s12 }
 0xb37   :  { %p1977_p13 = pnand %p1975_p12, %p1972_p11 }
 0xb39   :  { %1980 = shalt.err (!%p1977_p13)
}
 0xb3a   :  { %1440 = dma.vmem_to_hbm [thread:$0]  %s1435_s17, 256, %s2411_s12, [#allocation5], %s1993_s15, %s1993_s15, %s1994_s16  }
 0xb3b   :  { %1989 = dma.done.wait [#allocation5], 256  }
 0xb3c   :  { %1990 = vsyncadd [#allocation5], 4294967040 }
 0xb3d   :  { %1444 = vsyncpa [#allocation4], 1 }
 0xb3e   :  { %1445 = vsyncpa [#allocation7], 1 }
 0xb3f   :  { %1446 = vsyncpa [#allocation10], 1 }
 0xb40   :  { %1447 = vsyncpa [#allocation13], 1 }
 0xb41   :  { %1448 = vsyncpa [#allocation5], 1 }

</bundles_post_ra>
